<compile_context>
chip_gen: v6e
topology: v6e:2x2x1
jax: 0.10.0
libtpu: 0.0.40
codegen_flags: <defaults>
</compile_context>

<pallas_src>
import functools
import math

import jax
import jax.numpy as jnp
from jax import lax
from jax.experimental import pallas as pl
from jax.experimental.pallas import tpu as pltpu

EPS = 1e-5                      # PyTorch BatchNorm1d default eps
LANE = 128                      # output-channel padding unit (lane-dense stores, full MXU N)
INTER_DTYPE = jnp.bfloat16      # HBM dtype of y1 / y2 / y_shortcut (all math stays f32)
MAX_ROW_TILE = 512              # row-tile cap for the fused residual pass


# ----------------------------- Pallas kernels ------------------------------

def _bn_stats_rows(acc):
    """Per-block (sum, sum-of-squares) rows of an f32 (rows, C) accumulator."""
    return (jnp.sum(acc, axis=0, keepdims=True),
            jnp.sum(acc * acc, axis=0, keepdims=True))


def conv1_kernel(xf_ref, w1_ref, y1_ref, s1_ref, q1_ref, *, offsets, l_out):
    """conv1 (k=3, stride s) as <=3 accumulated MXU matmuls over shifted contiguous row
    windows of the stride-folded input; per-sample BN partial stats as extra outputs."""
    j0 = offsets[0]
    acc = jnp.dot(xf_ref[j0:j0 + l_out, :], w1_ref[0],
                  preferred_element_type=jnp.float32)
    for i in range(1, len(offsets)):
        j = offsets[i]
        acc += jnp.dot(xf_ref[j:j + l_out, :], w1_ref[i],
                       preferred_element_type=jnp.float32)
    y1_ref[...] = acc.astype(y1_ref.dtype)
    s1_ref[...], q1_ref[...] = _bn_stats_rows(acc)


def conv1_proj_kernel(xf_ref, w1_ref, ws_ref,
                      y1_ref, s1_ref, q1_ref, ysc_ref, ss_ref, qs_ref,
                      *, offsets, off_sc, l_out):
    """conv1 fused with the 1x1 strided projection-shortcut conv: the folded input block is
    DMA'd once and both matmul stacks run on it (the tiny 1x1 hides under conv1's MXU time)."""
    j0 = offsets[0]
    acc = jnp.dot(xf_ref[j0:j0 + l_out, :], w1_ref[0],
                  preferred_element_type=jnp.float32)
    for i in range(1, len(offsets)):
        j = offsets[i]
        acc += jnp.dot(xf_ref[j:j + l_out, :], w1_ref[i],
                       preferred_element_type=jnp.float32)
    y1_ref[...] = acc.astype(y1_ref.dtype)
    s1_ref[...], q1_ref[...] = _bn_stats_rows(acc)

    acc_s = jnp.dot(xf_ref[off_sc:off_sc + l_out, :], ws_ref[0],
                    preferred_element_type=jnp.float32)
    ysc_ref[...] = acc_s.astype(ysc_ref.dtype)
    ss_ref[...], qs_ref[...] = _bn_stats_rows(acc_s)


def bnrelu_conv2_kernel(y1_ref, sc1_ref, sh1_ref, w2_ref, y2_ref, s2_ref, q2_ref, *, l_out):
    """bn1 + relu applied on the fly to the raw conv1 output (never re-read from HBM), then
    conv2 (k=3, stride 1, pad 1) with the zero halo handled by sublane rolls + row masks
    (XLU ops) instead of a padded VMEM scratch copy."""
    a = jnp.maximum(y1_ref[...].astype(jnp.float32) * sc1_ref[...] + sh1_ref[...], 0.0)
    d_lo = jnp.dot(a, w2_ref[0], preferred_element_type=jnp.float32)    # tap reading a[l-1]
    d_mid = jnp.dot(a, w2_ref[1], preferred_element_type=jnp.float32)   # tap reading a[l]
    d_hi = jnp.dot(a, w2_ref[2], preferred_element_type=jnp.float32)    # tap reading a[l+1]
    row = lax.broadcasted_iota(jnp.int32, d_mid.shape, 0)
    acc = d_mid
    acc = acc + jnp.where(row == 0, 0.0, pltpu.roll(d_lo, shift=1, axis=0))
    acc = acc + jnp.where(row == l_out - 1, 0.0,
                          pltpu.roll(d_hi, shift=l_out - 1, axis=0))
    y2_ref[...] = acc.astype(y2_ref.dtype)
    s2_ref[...], q2_ref[...] = _bn_stats_rows(acc)


def residual_proj_kernel(y2_ref, s2_ref, h2_ref, ysc_ref, ss_ref, hs_ref, o_ref):
    # relu( bn2(y2) + bn_sc(ysc) ), both BNs pre-folded into (scale, shift); math in f32.
    o_ref[...] = jnp.maximum(
        y2_ref[...].astype(jnp.float32) * s2_ref[...] + h2_ref[...]
        + ysc_ref[...].astype(jnp.float32) * ss_ref[...] + hs_ref[...], 0.0)


def residual_id_kernel(y2_ref, s2_ref, h2_ref, x_ref, o_ref):
    # relu( bn2(y2) + x )  (identity shortcut)
    o_ref[...] = jnp.maximum(
        y2_ref[...].astype(jnp.float32) * s2_ref[...] + h2_ref[...]
        + x_ref[...].astype(jnp.float32), 0.0)


# --------------------------- pallas_call wrappers ---------------------------

def _vec_spec(c):
    return pl.BlockSpec((1, c), lambda n: (0, 0))


def _plane_spec(l, c):
    # one full (L, C) plane per batch sample (leading dim squeezed)
    return pl.BlockSpec((None, l, c), lambda n: (n, 0, 0))


def _stat_spec(c):
    # one (1, C) partial-stat row per batch sample (leading dim squeezed)
    return pl.BlockSpec((None, 1, c), lambda n: (n, 0, 0))


def _vmem_params(blocks, semantics=("parallel",)):
    """Compiler params with an explicit VMEM limit derived from the actual block/scratch sizes
    (x2 for double-buffering + headroom), capped at v7x's 64 MiB physical VMEM."""
    need = 0
    for shape, dtype in blocks:
        elems = math.prod(int(d) for d in shape if d is not None)
        need += elems * jnp.dtype(dtype).itemsize
    limit = int(min(max(2 * need + (2 << 20), 32 << 20), 64 << 20))
    return pltpu.CompilerParams(dimension_semantics=semantics, vmem_limit_bytes=limit)


def _conv1_pass(x_fold, w1f, offsets, l_out, ws_f=None, off_sc=None):
    # TODO(synk): for very long sequences add an L-tile grid axis (with a 2-row halo) so the
    # per-sample blocks also fit v7x's 64 MiB VMEM; at these shapes one plane per step is fine.
    n_batch, l_fold, k_dim = x_fold.shape
    c_out = w1f.shape[-1]
    y_shape = jax.ShapeDtypeStruct((n_batch, l_out, c_out), INTER_DTYPE)
    st_shape = jax.ShapeDtypeStruct((n_batch, 1, c_out), jnp.float32)

    in_specs = [_plane_spec(l_fold, k_dim),
                pl.BlockSpec(w1f.shape, lambda n: (0, 0, 0))]
    args = [x_fold, w1f]
    blocks = [((l_fold, k_dim), x_fold.dtype), (w1f.shape, w1f.dtype)]
    y_blocks = [((l_out, c_out), INTER_DTYPE),
                ((1, c_out), jnp.float32), ((1, c_out), jnp.float32)]

    if ws_f is None:
        kernel = functools.partial(conv1_kernel, offsets=offsets, l_out=int(l_out))
        out_shape = (y_shape, st_shape, st_shape)
        out_specs = (_plane_spec(l_out, c_out), _stat_spec(c_out), _stat_spec(c_out))
        blocks += y_blocks
    else:
        kernel = functools.partial(conv1_proj_kernel, offsets=offsets,
                                   off_sc=int(off_sc), l_out=int(l_out))
        in_specs.append(pl.BlockSpec(ws_f.shape, lambda n: (0, 0, 0)))
        args.append(ws_f)
        out_shape = (y_shape, st_shape, st_shape, y_shape, st_shape, st_shape)
        out_specs = (_plane_spec(l_out, c_out), _stat_spec(c_out), _stat_spec(c_out),
                     _plane_spec(l_out, c_out), _stat_spec(c_out), _stat_spec(c_out))
        blocks += [(ws_f.shape, ws_f.dtype)] + y_blocks + y_blocks

    return pl.pallas_call(
        kernel,
        out_shape=out_shape,
        grid=(n_batch,),
        in_specs=in_specs,
        out_specs=out_specs,
        compiler_params=_vmem_params(blocks),
    )(*args)


def _bnrelu_conv2_pass(y1, scale1, shift1, w2f):
    n_batch, l1, c = y1.shape
    kernel = functools.partial(bnrelu_conv2_kernel, l_out=int(l1))
    blocks = [((l1, c), y1.dtype), ((1, c), jnp.float32), ((1, c), jnp.float32),
              (w2f.shape, w2f.dtype),
              ((l1, c), INTER_DTYPE), ((1, c), jnp.float32), ((1, c), jnp.float32)]
    return pl.pallas_call(
        kernel,
        out_shape=(jax.ShapeDtypeStruct((n_batch, l1, c), INTER_DTYPE),
                   jax.ShapeDtypeStruct((n_batch, 1, c), jnp.float32),
                   jax.ShapeDtypeStruct((n_batch, 1, c), jnp.float32)),
        grid=(n_batch,),
        in_specs=[_plane_spec(l1, c), _vec_spec(c), _vec_spec(c),
                  pl.BlockSpec(w2f.shape, lambda n: (0, 0, 0))],
        out_specs=(_plane_spec(l1, c), _stat_spec(c), _stat_spec(c)),
        compiler_params=_vmem_params(blocks),
    )(y1, scale1, shift1, w2f)


def _pick_row_tile(rows, max_tile=MAX_ROW_TILE):
    """Largest multiple of 8 that divides `rows` and is <= max_tile (falls back to the full
    row count, which is always a legal full-dim block).  Avoids any row-padding copies."""
    if rows % 8 != 0:
        return rows
    best, t, top = 8, 8, min(rows, max_tile)
    while t <= top:
        if rows % t == 0:
            best = t
        t += 8
    return best


def _residual_proj(y2, s2, h2, ysc, ss, hs):
    n_batch, l1, c = y2.shape
    rows = n_batch * l1
    tile = _pick_row_tile(rows)
    row_spec = pl.BlockSpec((tile, c), lambda i: (i, 0))
    vec = pl.BlockSpec((1, c), lambda i: (0, 0))
    blocks = [((tile, c), y2.dtype), ((1, c), jnp.float32), ((1, c), jnp.float32),
              ((tile, c), ysc.dtype), ((1, c), jnp.float32), ((1, c), jnp.float32),
              ((tile, c), jnp.float32)]
    out = pl.pallas_call(
        residual_proj_kernel,
        out_shape=jax.ShapeDtypeStruct((rows, c), jnp.float32),
        grid=(rows // tile,),
        in_specs=[row_spec, vec, vec, row_spec, vec, vec],
        out_specs=row_spec,
        compiler_params=_vmem_params(blocks),
    )(y2.reshape(rows, c), s2, h2, ysc.reshape(rows, c), ss, hs)
    return out.reshape(n_batch, l1, c)


def _residual_id(y2, s2, h2, x_nlc):
    n_batch, l1, c = y2.shape
    rows = n_batch * l1
    tile = _pick_row_tile(rows)
    row_spec = pl.BlockSpec((tile, c), lambda i: (i, 0))
    vec = pl.BlockSpec((1, c), lambda i: (0, 0))
    blocks = [((tile, c), y2.dtype), ((1, c), jnp.float32), ((1, c), jnp.float32),
              ((tile, c), x_nlc.dtype), ((tile, c), jnp.float32)]
    out = pl.pallas_call(
        residual_id_kernel,
        out_shape=jax.ShapeDtypeStruct((rows, c), jnp.float32),
        grid=(rows // tile,),
        in_specs=[row_spec, vec, vec, row_spec],
        out_specs=row_spec,
        compiler_params=_vmem_params(blocks),
    )(y2.reshape(rows, c), s2, h2, x_nlc.reshape(rows, c))
    return out.reshape(n_batch, l1, c)


# ------------------------------- glue (JAX) ---------------------------------

def _pad_last(a, target):
    pad = target - a.shape[-1]
    if pad == 0:
        return a
    return jnp.pad(a, [(0, 0)] * (a.ndim - 1) + [(0, pad)])


def _fold_input(x_nlc, pad, k, stride):
    """Zero-pad along L and fold the stride into the channel (lane) axis:
    (N, L, C) -> (N, ceil((L+2*pad)/stride), stride*C).  Contiguous reshape."""
    n_batch, length, c = x_nlc.shape
    l_out = (length + 2 * pad - k) // stride + 1
    l_pad = length + 2 * pad
    l_pad_r = -(-l_pad // stride) * stride
    xp = jnp.pad(x_nlc, ((0, 0), (pad, pad + (l_pad_r - l_pad)), (0, 0)))
    return xp.reshape(n_batch, l_pad_r // stride, stride * c), l_out


def _fold_weights(w, stride, pos0, c_out_pad, c_in_eff):
    """PyTorch conv1d weight (C_out, C_in, k) whose taps sit at padded positions pos0+t
    -> stacked (n_offsets, stride*c_in_eff, c_out_pad) matrices plus the folded row offsets,
    so every tap group becomes one contiguous-window matmul against the folded input."""
    c_out, c_in, k = w.shape
    positions = [pos0 + t for t in range(k)]
    js = sorted(set(p // stride for p in positions))
    jmap = {j: i for i, j in enumerate(js)}
    wf = jnp.zeros((len(js), stride * c_in_eff, c_out_pad), jnp.float32)
    for t, p in enumerate(positions):
        j, r = p // stride, p % stride
        wf = wf.at[jmap[j], r * c_in_eff:r * c_in_eff + c_in, :c_out].add(
            jnp.transpose(w[:, :, t], (1, 0)).astype(jnp.float32))
    return wf, tuple(int(j) for j in js)


def _bn_scale_shift(psum, psumsq, gamma_pad, beta_pad, count):
    """Reduce per-sample partial (sum, sum_sq) rows to BN (scale, shift) — tiny (C,) work.
    TODO(synk): compensated / centered accumulation if E[x^2]-E[x]^2 cancellation ever matters."""
    s = jnp.sum(psum, axis=0)       # (1, C)
    q = jnp.sum(psumsq, axis=0)     # (1, C)
    mean = s / count
    var = jnp.maximum(q / count - mean * mean, 0.0)
    scale = gamma_pad.reshape(1, -1) * lax.rsqrt(var + EPS)
    shift = beta_pad.reshape(1, -1) - mean * scale
    return scale, shift


def basic_block_1d(x_ncl, p, stride):
    """Forward pass of BasicBlock1D. x_ncl: (N, C_in, L) -> (N, planes, L_out).
    Conv biases (b1/b2/bs) are deliberately unused: a per-channel bias immediately followed by
    training-mode BatchNorm cancels exactly, so the forward output is unchanged."""
    n_batch, c_in, length = x_ncl.shape
    planes = p["w1"].shape[0]
    c_pad = -(-planes // LANE) * LANE
    has_proj = (stride != 1) or (c_in != planes)

    # TODO(synk): keep activations channels-last across consecutive blocks so the NCL<->NLC
    # transposes at the block boundary amortize away (one extra HBM round trip per block).
    x = jnp.transpose(x_ncl, (0, 2, 1)).astype(jnp.float32)            # (N, L, C_in)

    # Identity shortcut: pad x's channels to the lane-dense width so the same array feeds
    # conv1 and the pass-3 residual add.  Projection shortcut: keep the small K dim unpadded.
    x_conv = x if has_proj else _pad_last(x, c_pad)
    c_in_eff = x_conv.shape[-1]

    # One padded + stride-folded view of x feeds conv1 and (if present) the 1x1 projection.
    x_fold, l1 = _fold_input(x_conv, pad=1, k=3, stride=stride)
    count = float(n_batch * l1)

    g1p = _pad_last(p["g1"].astype(jnp.float32), c_pad)
    be1p = _pad_last(p["be1"].astype(jnp.float32), c_pad)
    g2p = _pad_last(p["g2"].astype(jnp.float32), c_pad)
    be2p = _pad_last(p["be2"].astype(jnp.float32), c_pad)

    # pass 1: conv1 (+ fused 1x1 projection shortcut) + per-sample BN partial stats.
    w1f, off1 = _fold_weights(p["w1"], stride, 0, c_pad, c_in_eff)
    if has_proj:
        wsf, offs = _fold_weights(p["ws"], stride, 1, c_pad, c_in_eff)
        y1, s1, q1, ysc, ss_, qs_ = _conv1_pass(x_fold, w1f, off1, l1,
                                                ws_f=wsf, off_sc=offs[0])
    else:
        y1, s1, q1 = _conv1_pass(x_fold, w1f, off1, l1)
    sc1, sh1 = _bn_scale_shift(s1, q1, g1p, be1p, count)

    # pass 2: bn1 + relu on the fly + conv2 (k=3, s=1, pad=1) + BN2 partial stats.
    w2f = jnp.zeros((3, c_pad, c_pad), jnp.float32)
    w2f = w2f.at[:, :planes, :planes].set(
        jnp.transpose(p["w2"].astype(jnp.float32), (2, 1, 0)))          # (k, C_in, C_out)
    y2, s2, q2 = _bnrelu_conv2_pass(y1, sc1, sh1, w2f)
    sc2, sh2 = _bn_scale_shift(s2, q2, g2p, be2p, count)

    # pass 3: bn2 + shortcut + residual add + relu (N*L collapsed into big row tiles).
    if has_proj:
        gsp = _pad_last(p["gs"].astype(jnp.float32), c_pad)
        besp = _pad_last(p["bes"].astype(jnp.float32), c_pad)
        scs, shs = _bn_scale_shift(ss_, qs_, gsp, besp, count)
        out = _residual_proj(y2, sc2, sh2, ysc, scs, shs)
    else:
        out = _residual_id(y2, sc2, sh2, x_conv)

    return jnp.transpose(out[..., :planes], (0, 2, 1))                  # (N, planes, L_out)


# ----------------------- deterministic parameter init -----------------------

def init_params(key, in_planes, planes, stride):
    ks = jax.random.split(key, 12)
    p = {
        "w1": 0.2 * jax.random.normal(ks[0], (planes, in_planes, 3), jnp.float32),
        "b1": 0.1 * jax.random.normal(ks[1], (planes,), jnp.float32),
        "g1": 1.0 + 0.1 * jax.random.normal(ks[2], (planes,), jnp.float32),
        "be1": 0.1 * jax.random.normal(ks[3], (planes,), jnp.float32),
        "w2": 0.2 * jax.random.normal(ks[4], (planes, planes, 3), jnp.float32),
        "b2": 0.1 * jax.random.normal(ks[5], (planes,), jnp.float32),
        "g2": 1.0 + 0.1 * jax.random.normal(ks[6], (planes,), jnp.float32),
        "be2": 0.1 * jax.random.normal(ks[7], (planes,), jnp.float32),
    }
    if stride != 1 or in_planes != planes:
        p.update({
            "ws": 0.2 * jax.random.normal(ks[8], (planes, in_planes, 1), jnp.float32),
            "bs": 0.1 * jax.random.normal(ks[9], (planes,), jnp.float32),
            "gs": 1.0 + 0.1 * jax.random.normal(ks[10], (planes,), jnp.float32),
            "bes": 0.1 * jax.random.normal(ks[11], (planes,), jnp.float32),
        })
    return p


# ---------------------------- pure-JAX reference ----------------------------

def _ref_conv1d(x, w, b, stride, pad):
    y = lax.conv_general_dilated(x, w, (stride,), [(pad, pad)],
                                 dimension_numbers=("NCH", "OIH", "NCH"),
                                 precision=lax.Precision.HIGHEST)
    return y + b[None, :, None]


def _ref_bn_train(y, gamma, beta):
    mean = y.mean(axis=(0, 2), keepdims=True)
    var = y.var(axis=(0, 2), keepdims=True)  # biased, like PyTorch training-mode BN
    return (y - mean) / jnp.sqrt(var + EPS) * gamma[None, :, None] + beta[None, :, None]


def basic_block_1d_ref(x, p, stride):
    out = jax.nn.relu(_ref_bn_train(_ref_conv1d(x, p["w1"], p["b1"], stride, 1),
                                    p["g1"], p["be1"]))
    out = _ref_bn_train(_ref_conv1d(out, p["w2"], p["b2"], 1, 1), p["g2"], p["be2"])
    if stride != 1 or x.shape[1] != p["w1"].shape[0]:
        sc = _ref_bn_train(_ref_conv1d(x, p["ws"], p["bs"], stride, 0), p["gs"], p["bes"])
    else:
        sc = x
    return jax.nn.relu(out + sc)


# ----------------------------------- main ------------------------------------

if __name__ == "__main__":
    key = jax.random.PRNGKey(0)
    kx, kp, kx2, kp2 = jax.random.split(key, 4)

    fwd = jax.jit(basic_block_1d, static_argnums=2)

    # Tolerance covers default MXU precision (bf16 operand rounding) PLUS the bf16 HBM storage
    # of the y1/y2/ysc intermediates vs. the Precision.HIGHEST pure-f32 reference; structural
    # errors would be O(1).
    TOL = 6e-2

    # config A: projection shortcut (stride=2, channel change)
    n_batch, in_planes, planes, length, stride = 2, 4, 8, 16, 2
    x = jax.random.normal(kx, (n_batch, in_planes, length), jnp.float32)
    params = init_params(kp, in_planes, planes, stride)
    out = jax.block_until_ready(fwd(x, params, stride))
    ref = basic_block_1d_ref(x, params, stride)
    l_out = (length - 1) // stride + 1
    assert out.shape == ref.shape == (n_batch, planes, l_out), (out.shape, ref.shape)
    assert jnp.allclose(out, ref, atol=TOL, rtol=TOL), float(jnp.max(jnp.abs(out - ref)))

    # config B: identity shortcut (stride=1, in_planes == planes)
    n_batch, in_planes, planes, length, stride = 2, 8, 8, 16, 1
    x2 = jax.random.normal(kx2, (n_batch, in_planes, length), jnp.float32)
    params2 = init_params(kp2, in_planes, planes, stride)
    out2 = jax.block_until_ready(fwd(x2, params2, stride))
    ref2 = basic_block_1d_ref(x2, params2, stride)
    assert out2.shape == ref2.shape == (n_batch, planes, length), (out2.shape, ref2.shape)
    assert jnp.allclose(out2, ref2, atol=TOL, rtol=TOL), float(jnp.max(jnp.abs(out2 - ref2)))

    print("KERNEL_OK")
</pallas_src>

<mosaic_0001>
module attributes {stable_mosaic.version = 11 : i64} {
  func.func @conv1_proj_kernel(%arg0: i32, %arg1: memref<1x9x8xf32, #tpu.memory_space<vmem>>, %arg2: memref<2x8x128xf32, #tpu.memory_space<vmem>>, %arg3: memref<1x8x128xf32, #tpu.memory_space<vmem>>, %arg4: memref<1x8x128xbf16, #tpu.memory_space<vmem>>, %arg5: memref<1x1x128xf32, #tpu.memory_space<vmem>>, %arg6: memref<1x1x128xf32, #tpu.memory_space<vmem>>, %arg7: memref<1x8x128xbf16, #tpu.memory_space<vmem>>, %arg8: memref<1x1x128xf32, #tpu.memory_space<vmem>>, %arg9: memref<1x1x128xf32, #tpu.memory_space<vmem>>) attributes {dimension_semantics = [#tpu.dimension_semantics<parallel>], iteration_bounds = array<i64: 2>, scalar_prefetch = 0 : i64, scratch_operands = 0 : i64, tpu.core_type = #tpu.core_type<tc>, window_params = [{transform_indices = @transform_0, window_bounds = array<i64: 1, 9, 8>}, {pipeline_mode = #tpu.pipeline_mode<synchronous>, transform_indices = @transform_1, window_bounds = array<i64: 2, 8, 128>}, {pipeline_mode = #tpu.pipeline_mode<synchronous>, transform_indices = @transform_2, window_bounds = array<i64: 1, 8, 128>}, {transform_indices = @transform_3, window_bounds = array<i64: 1, 8, 128>}, {transform_indices = @transform_4, window_bounds = array<i64: 1, 1, 128>}, {transform_indices = @transform_5, window_bounds = array<i64: 1, 1, 128>}, {transform_indices = @transform_6, window_bounds = array<i64: 1, 8, 128>}, {transform_indices = @transform_7, window_bounds = array<i64: 1, 1, 128>}, {transform_indices = @transform_8, window_bounds = array<i64: 1, 1, 128>}]} {
    %c0 = arith.constant 0 : index
    %c0_0 = arith.constant 0 : index
    %c0_1 = arith.constant 0 : index
    %0 = vector.load %arg1[%c0, %c0_0, %c0_1] : memref<1x9x8xf32, #tpu.memory_space<vmem>>, vector<1x8x8xf32>
    %1 = vector.shape_cast %0 : vector<1x8x8xf32> to vector<8x8xf32>
    %c0_2 = arith.constant 0 : index
    %c0_3 = arith.constant 0 : index
    %c0_4 = arith.constant 0 : index
    %2 = vector.load %arg2[%c0_2, %c0_3, %c0_4] : memref<2x8x128xf32, #tpu.memory_space<vmem>>, vector<1x8x128xf32>
    %3 = vector.shape_cast %2 : vector<1x8x128xf32> to vector<8x128xf32>
    %cst = arith.constant dense<0.000000e+00> : vector<8x128xf32>
    %4 = tpu.matmul %1, %3, %cst {dimension_numbers = #tpu.dot_dimension_numbers<[1], [0], [0], [1], [0, 0, 1, 1], [], []>} : vector<8x8xf32>, vector<8x128xf32>, vector<8x128xf32> -> vector<8x128xf32>
    %c0_5 = arith.constant 0 : index
    %c1 = arith.constant 1 : index
    %c0_6 = arith.constant 0 : index
    %5 = vector.load %arg1[%c0_5, %c1, %c0_6] : memref<1x9x8xf32, #tpu.memory_space<vmem>>, vector<1x8x8xf32>
    %6 = vector.shape_cast %5 : vector<1x8x8xf32> to vector<8x8xf32>
    %c1_7 = arith.constant 1 : index
    %c0_8 = arith.constant 0 : index
    %c0_9 = arith.constant 0 : index
    %7 = vector.load %arg2[%c1_7, %c0_8, %c0_9] : memref<2x8x128xf32, #tpu.memory_space<vmem>>, vector<1x8x128xf32>
    %8 = vector.shape_cast %7 : vector<1x8x128xf32> to vector<8x128xf32>
    %cst_10 = arith.constant dense<0.000000e+00> : vector<8x128xf32>
    %9 = tpu.matmul %6, %8, %cst_10 {dimension_numbers = #tpu.dot_dimension_numbers<[1], [0], [0], [1], [0, 0, 1, 1], [], []>} : vector<8x8xf32>, vector<8x128xf32>, vector<8x128xf32> -> vector<8x128xf32>
    %10 = arith.addf %4, %9 : vector<8x128xf32>
    %11 = arith.truncf %10 : vector<8x128xf32> to vector<8x128xbf16>
    %c0_11 = arith.constant 0 : index
    %c0_12 = arith.constant 0 : index
    %c0_13 = arith.constant 0 : index
    %12 = vector.load %arg4[%c0_11, %c0_12, %c0_13] : memref<1x8x128xbf16, #tpu.memory_space<vmem>>, vector<1x8x128xbf16>
    %13 = vector.shape_cast %12 : vector<1x8x128xbf16> to vector<8x128xbf16>
    %14 = vector.shape_cast %11 : vector<8x128xbf16> to vector<1x8x128xbf16>
    tpu.vector_store %arg4[%c0_11, %c0_12, %c0_13], %14 {strides = array<i32>} : memref<1x8x128xbf16, #tpu.memory_space<vmem>>, vector<1x8x128xbf16>,
    %cst_14 = arith.constant dense<0.000000e+00> : vector<128xf32>
    %15 = vector.multi_reduction <add>, %10, %cst_14 [0] : vector<8x128xf32> to vector<128xf32>
    %16 = vector.shape_cast %15 : vector<128xf32> to vector<1x128xf32>
    %17 = arith.mulf %10, %10 : vector<8x128xf32>
    %cst_15 = arith.constant dense<0.000000e+00> : vector<128xf32>
    %18 = vector.multi_reduction <add>, %17, %cst_15 [0] : vector<8x128xf32> to vector<128xf32>
    %19 = vector.shape_cast %18 : vector<128xf32> to vector<1x128xf32>
    %c0_16 = arith.constant 0 : index
    %c0_17 = arith.constant 0 : index
    %c0_18 = arith.constant 0 : index
    %20 = vector.load %arg5[%c0_16, %c0_17, %c0_18] : memref<1x1x128xf32, #tpu.memory_space<vmem>>, vector<1x1x128xf32>
    %21 = vector.shape_cast %20 : vector<1x1x128xf32> to vector<1x128xf32>
    %22 = vector.shape_cast %16 : vector<1x128xf32> to vector<1x1x128xf32>
    tpu.vector_store %arg5[%c0_16, %c0_17, %c0_18], %22 {strides = array<i32>} : memref<1x1x128xf32, #tpu.memory_space<vmem>>, vector<1x1x128xf32>,
    %c0_19 = arith.constant 0 : index
    %c0_20 = arith.constant 0 : index
    %c0_21 = arith.constant 0 : index
    %23 = vector.load %arg6[%c0_19, %c0_20, %c0_21] : memref<1x1x128xf32, #tpu.memory_space<vmem>>, vector<1x1x128xf32>
    %24 = vector.shape_cast %23 : vector<1x1x128xf32> to vector<1x128xf32>
    %25 = vector.shape_cast %19 : vector<1x128xf32> to vector<1x1x128xf32>
    tpu.vector_store %arg6[%c0_19, %c0_20, %c0_21], %25 {strides = array<i32>} : memref<1x1x128xf32, #tpu.memory_space<vmem>>, vector<1x1x128xf32>,
    %c0_22 = arith.constant 0 : index
    %c0_23 = arith.constant 0 : index
    %c0_24 = arith.constant 0 : index
    %26 = vector.load %arg1[%c0_22, %c0_23, %c0_24] : memref<1x9x8xf32, #tpu.memory_space<vmem>>, vector<1x8x8xf32>
    %27 = vector.shape_cast %26 : vector<1x8x8xf32> to vector<8x8xf32>
    %c0_25 = arith.constant 0 : index
    %c0_26 = arith.constant 0 : index
    %c0_27 = arith.constant 0 : index
    %28 = vector.load %arg3[%c0_25, %c0_26, %c0_27] : memref<1x8x128xf32, #tpu.memory_space<vmem>>, vector<1x8x128xf32>
    %29 = vector.shape_cast %28 : vector<1x8x128xf32> to vector<8x128xf32>
    %cst_28 = arith.constant dense<0.000000e+00> : vector<8x128xf32>
    %30 = tpu.matmul %27, %29, %cst_28 {dimension_numbers = #tpu.dot_dimension_numbers<[1], [0], [0], [1], [0, 0, 1, 1], [], []>} : vector<8x8xf32>, vector<8x128xf32>, vector<8x128xf32> -> vector<8x128xf32>
    %31 = arith.truncf %30 : vector<8x128xf32> to vector<8x128xbf16>
    %c0_29 = arith.constant 0 : index
    %c0_30 = arith.constant 0 : index
    %c0_31 = arith.constant 0 : index
    %32 = vector.load %arg7[%c0_29, %c0_30, %c0_31] : memref<1x8x128xbf16, #tpu.memory_space<vmem>>, vector<1x8x128xbf16>
    %33 = vector.shape_cast %32 : vector<1x8x128xbf16> to vector<8x128xbf16>
    %34 = vector.shape_cast %31 : vector<8x128xbf16> to vector<1x8x128xbf16>
    tpu.vector_store %arg7[%c0_29, %c0_30, %c0_31], %34 {strides = array<i32>} : memref<1x8x128xbf16, #tpu.memory_space<vmem>>, vector<1x8x128xbf16>,
    %cst_32 = arith.constant dense<0.000000e+00> : vector<128xf32>
    %35 = vector.multi_reduction <add>, %30, %cst_32 [0] : vector<8x128xf32> to vector<128xf32>
    %36 = vector.shape_cast %35 : vector<128xf32> to vector<1x128xf32>
    %37 = arith.mulf %30, %30 : vector<8x128xf32>
    %cst_33 = arith.constant dense<0.000000e+00> : vector<128xf32>
    %38 = vector.multi_reduction <add>, %37, %cst_33 [0] : vector<8x128xf32> to vector<128xf32>
    %39 = vector.shape_cast %38 : vector<128xf32> to vector<1x128xf32>
    %c0_34 = arith.constant 0 : index
    %c0_35 = arith.constant 0 : index
    %c0_36 = arith.constant 0 : index
    %40 = vector.load %arg8[%c0_34, %c0_35, %c0_36] : memref<1x1x128xf32, #tpu.memory_space<vmem>>, vector<1x1x128xf32>
    %41 = vector.shape_cast %40 : vector<1x1x128xf32> to vector<1x128xf32>
    %42 = vector.shape_cast %36 : vector<1x128xf32> to vector<1x1x128xf32>
    tpu.vector_store %arg8[%c0_34, %c0_35, %c0_36], %42 {strides = array<i32>} : memref<1x1x128xf32, #tpu.memory_space<vmem>>, vector<1x1x128xf32>,
    %c0_37 = arith.constant 0 : index
    %c0_38 = arith.constant 0 : index
    %c0_39 = arith.constant 0 : index
    %43 = vector.load %arg9[%c0_37, %c0_38, %c0_39] : memref<1x1x128xf32, #tpu.memory_space<vmem>>, vector<1x1x128xf32>
    %44 = vector.shape_cast %43 : vector<1x1x128xf32> to vector<1x128xf32>
    %45 = vector.shape_cast %39 : vector<1x128xf32> to vector<1x1x128xf32>
    tpu.vector_store %arg9[%c0_37, %c0_38, %c0_39], %45 {strides = array<i32>} : memref<1x1x128xf32, #tpu.memory_space<vmem>>, vector<1x1x128xf32>,
    return
  }
  func.func @transform_0(%arg0: i32) -> (i32, i32, i32) {
    %c0_i32 = arith.constant 0 : i32
    %c0_i32_0 = arith.constant 0 : i32
    %c0_i32_1 = arith.constant 0 : i32
    return %arg0, %c0_i32, %c0_i32_0 : i32, i32, i32
  }
  func.func @transform_1(%arg0: i32) -> (i32, i32, i32) {
    %c0_i32 = arith.constant 0 : i32
    %c0_i32_0 = arith.constant 0 : i32
    %c0_i32_1 = arith.constant 0 : i32
    %c0_i32_2 = arith.constant 0 : i32
    return %c0_i32, %c0_i32_0, %c0_i32_1 : i32, i32, i32
  }
  func.func @transform_2(%arg0: i32) -> (i32, i32, i32) {
    %c0_i32 = arith.constant 0 : i32
    %c0_i32_0 = arith.constant 0 : i32
    %c0_i32_1 = arith.constant 0 : i32
    %c0_i32_2 = arith.constant 0 : i32
    return %c0_i32, %c0_i32_0, %c0_i32_1 : i32, i32, i32
  }
  func.func @transform_3(%arg0: i32) -> (i32, i32, i32) {
    %c0_i32 = arith.constant 0 : i32
    %c0_i32_0 = arith.constant 0 : i32
    %c0_i32_1 = arith.constant 0 : i32
    return %arg0, %c0_i32, %c0_i32_0 : i32, i32, i32
  }
  func.func @transform_4(%arg0: i32) -> (i32, i32, i32) {
    %c0_i32 = arith.constant 0 : i32
    %c0_i32_0 = arith.constant 0 : i32
    %c0_i32_1 = arith.constant 0 : i32
    return %arg0, %c0_i32, %c0_i32_0 : i32, i32, i32
  }
  func.func @transform_5(%arg0: i32) -> (i32, i32, i32) {
    %c0_i32 = arith.constant 0 : i32
    %c0_i32_0 = arith.constant 0 : i32
    %c0_i32_1 = arith.constant 0 : i32
    return %arg0, %c0_i32, %c0_i32_0 : i32, i32, i32
  }
  func.func @transform_6(%arg0: i32) -> (i32, i32, i32) {
    %c0_i32 = arith.constant 0 : i32
    %c0_i32_0 = arith.constant 0 : i32
    %c0_i32_1 = arith.constant 0 : i32
    return %arg0, %c0_i32, %c0_i32_0 : i32, i32, i32
  }
  func.func @transform_7(%arg0: i32) -> (i32, i32, i32) {
    %c0_i32 = arith.constant 0 : i32
    %c0_i32_0 = arith.constant 0 : i32
    %c0_i32_1 = arith.constant 0 : i32
    return %arg0, %c0_i32, %c0_i32_0 : i32, i32, i32
  }
  func.func @transform_8(%arg0: i32) -> (i32, i32, i32) {
    %c0_i32 = arith.constant 0 : i32
    %c0_i32_0 = arith.constant 0 : i32
    %c0_i32_1 = arith.constant 0 : i32
    return %arg0, %c0_i32, %c0_i32_0 : i32, i32, i32
  }
}

module attributes {stable_mosaic.version = 11 : i64} {
  func.func @bnrelu_conv2_kernel(%arg0: i32, %arg1: memref<1x8x128xbf16, #tpu.memory_space<vmem>>, %arg2: memref<1x128xf32, #tpu.memory_space<vmem>>, %arg3: memref<1x128xf32, #tpu.memory_space<vmem>>, %arg4: memref<3x128x128xf32, #tpu.memory_space<vmem>>, %arg5: memref<1x8x128xbf16, #tpu.memory_space<vmem>>, %arg6: memref<1x1x128xf32, #tpu.memory_space<vmem>>, %arg7: memref<1x1x128xf32, #tpu.memory_space<vmem>>) attributes {dimension_semantics = [#tpu.dimension_semantics<parallel>], iteration_bounds = array<i64: 2>, scalar_prefetch = 0 : i64, scratch_operands = 0 : i64, tpu.core_type = #tpu.core_type<tc>, window_params = [{transform_indices = @transform_0, window_bounds = array<i64: 1, 8, 128>}, {pipeline_mode = #tpu.pipeline_mode<synchronous>, transform_indices = @transform_1, window_bounds = array<i64: 1, 128>}, {pipeline_mode = #tpu.pipeline_mode<synchronous>, transform_indices = @transform_2, window_bounds = array<i64: 1, 128>}, {pipeline_mode = #tpu.pipeline_mode<synchronous>, transform_indices = @transform_3, window_bounds = array<i64: 3, 128, 128>}, {transform_indices = @transform_4, window_bounds = array<i64: 1, 8, 128>}, {transform_indices = @transform_5, window_bounds = array<i64: 1, 1, 128>}, {transform_indices = @transform_6, window_bounds = array<i64: 1, 1, 128>}]} {
    %c0 = arith.constant 0 : index
    %c0_0 = arith.constant 0 : index
    %c0_1 = arith.constant 0 : index
    %0 = vector.load %arg1[%c0, %c0_0, %c0_1] : memref<1x8x128xbf16, #tpu.memory_space<vmem>>, vector<1x8x128xbf16>
    %1 = vector.shape_cast %0 : vector<1x8x128xbf16> to vector<8x128xbf16>
    %2 = arith.extf %1 : vector<8x128xbf16> to vector<8x128xf32>
    %c0_2 = arith.constant 0 : index
    %c0_3 = arith.constant 0 : index
    %3 = vector.load %arg2[%c0_2, %c0_3] : memref<1x128xf32, #tpu.memory_space<vmem>>, vector<1x128xf32>
    %4 = vector.broadcast %3 : vector<1x128xf32> to vector<8x128xf32>
    %5 = arith.mulf %2, %4 : vector<8x128xf32>
    %c0_4 = arith.constant 0 : index
    %c0_5 = arith.constant 0 : index
    %6 = vector.load %arg3[%c0_4, %c0_5] : memref<1x128xf32, #tpu.memory_space<vmem>>, vector<1x128xf32>
    %7 = vector.broadcast %6 : vector<1x128xf32> to vector<8x128xf32>
    %8 = arith.addf %5, %7 : vector<8x128xf32>
    %cst = arith.constant 0.000000e+00 : f32
    %9 = vector.broadcast %cst : f32 to vector<8x128xf32>
    %10 = arith.maximumf %8, %9 : vector<8x128xf32>
    %c0_6 = arith.constant 0 : index
    %c0_7 = arith.constant 0 : index
    %c0_8 = arith.constant 0 : index
    %11 = vector.load %arg4[%c0_6, %c0_7, %c0_8] : memref<3x128x128xf32, #tpu.memory_space<vmem>>, vector<1x128x128xf32>
    %12 = vector.shape_cast %11 : vector<1x128x128xf32> to vector<128x128xf32>
    %cst_9 = arith.constant dense<0.000000e+00> : vector<8x128xf32>
    %13 = tpu.matmul %10, %12, %cst_9 {dimension_numbers = #tpu.dot_dimension_numbers<[1], [0], [0], [1], [0, 0, 1, 1], [], []>} : vector<8x128xf32>, vector<128x128xf32>, vector<8x128xf32> -> vector<8x128xf32>
    %c1 = arith.constant 1 : index
    %c0_10 = arith.constant 0 : index
    %c0_11 = arith.constant 0 : index
    %14 = vector.load %arg4[%c1, %c0_10, %c0_11] : memref<3x128x128xf32, #tpu.memory_space<vmem>>, vector<1x128x128xf32>
    %15 = vector.shape_cast %14 : vector<1x128x128xf32> to vector<128x128xf32>
    %cst_12 = arith.constant dense<0.000000e+00> : vector<8x128xf32>
    %16 = tpu.matmul %10, %15, %cst_12 {dimension_numbers = #tpu.dot_dimension_numbers<[1], [0], [0], [1], [0, 0, 1, 1], [], []>} : vector<8x128xf32>, vector<128x128xf32>, vector<8x128xf32> -> vector<8x128xf32>
    %c2 = arith.constant 2 : index
    %c0_13 = arith.constant 0 : index
    %c0_14 = arith.constant 0 : index
    %17 = vector.load %arg4[%c2, %c0_13, %c0_14] : memref<3x128x128xf32, #tpu.memory_space<vmem>>, vector<1x128x128xf32>
    %18 = vector.shape_cast %17 : vector<1x128x128xf32> to vector<128x128xf32>
    %cst_15 = arith.constant dense<0.000000e+00> : vector<8x128xf32>
    %19 = tpu.matmul %10, %18, %cst_15 {dimension_numbers = #tpu.dot_dimension_numbers<[1], [0], [0], [1], [0, 0, 1, 1], [], []>} : vector<8x128xf32>, vector<128x128xf32>, vector<8x128xf32> -> vector<8x128xf32>
    %20 = tpu.iota {dimensions = array<i32: 0>} : vector<8x128xi32>
    %c0_i32 = arith.constant 0 : i32
    %21 = vector.broadcast %c0_i32 : i32 to vector<8x128xi32>
    %22 = arith.cmpi eq, %20, %21 : vector<8x128xi32>
    %c1_i32 = arith.constant 1 : i32
    %23 = tpu.dynamic_rotate %13 by %c1_i32 dim 0 : vector<8x128xf32>, i32 -> vector<8x128xf32>
    %cst_16 = arith.constant 0.000000e+00 : f32
    %24 = vector.broadcast %cst_16 : f32 to vector<8x128xf32>
    %25 = arith.select %22, %24, %23 : vector<8x128xi1>, vector<8x128xf32>
    %26 = arith.addf %16, %25 : vector<8x128xf32>
    %c7_i32 = arith.constant 7 : i32
    %27 = vector.broadcast %c7_i32 : i32 to vector<8x128xi32>
    %28 = arith.cmpi eq, %20, %27 : vector<8x128xi32>
    %c7_i32_17 = arith.constant 7 : i32
    %29 = tpu.dynamic_rotate %19 by %c7_i32_17 dim 0 : vector<8x128xf32>, i32 -> vector<8x128xf32>
    %cst_18 = arith.constant 0.000000e+00 : f32
    %30 = vector.broadcast %cst_18 : f32 to vector<8x128xf32>
    %31 = arith.select %28, %30, %29 : vector<8x128xi1>, vector<8x128xf32>
    %32 = arith.addf %26, %31 : vector<8x128xf32>
    %33 = arith.truncf %32 : vector<8x128xf32> to vector<8x128xbf16>
    %c0_19 = arith.constant 0 : index
    %c0_20 = arith.constant 0 : index
    %c0_21 = arith.constant 0 : index
    %34 = vector.load %arg5[%c0_19, %c0_20, %c0_21] : memref<1x8x128xbf16, #tpu.memory_space<vmem>>, vector<1x8x128xbf16>
    %35 = vector.shape_cast %34 : vector<1x8x128xbf16> to vector<8x128xbf16>
    %36 = vector.shape_cast %33 : vector<8x128xbf16> to vector<1x8x128xbf16>
    tpu.vector_store %arg5[%c0_19, %c0_20, %c0_21], %36 {strides = array<i32>} : memref<1x8x128xbf16, #tpu.memory_space<vmem>>, vector<1x8x128xbf16>,
    %cst_22 = arith.constant dense<0.000000e+00> : vector<128xf32>
    %37 = vector.multi_reduction <add>, %32, %cst_22 [0] : vector<8x128xf32> to vector<128xf32>
    %38 = vector.shape_cast %37 : vector<128xf32> to vector<1x128xf32>
    %39 = arith.mulf %32, %32 : vector<8x128xf32>
    %cst_23 = arith.constant dense<0.000000e+00> : vector<128xf32>
    %40 = vector.multi_reduction <add>, %39, %cst_23 [0] : vector<8x128xf32> to vector<128xf32>
    %41 = vector.shape_cast %40 : vector<128xf32> to vector<1x128xf32>
    %c0_24 = arith.constant 0 : index
    %c0_25 = arith.constant 0 : index
    %c0_26 = arith.constant 0 : index
    %42 = vector.load %arg6[%c0_24, %c0_25, %c0_26] : memref<1x1x128xf32, #tpu.memory_space<vmem>>, vector<1x1x128xf32>
    %43 = vector.shape_cast %42 : vector<1x1x128xf32> to vector<1x128xf32>
    %44 = vector.shape_cast %38 : vector<1x128xf32> to vector<1x1x128xf32>
    tpu.vector_store %arg6[%c0_24, %c0_25, %c0_26], %44 {strides = array<i32>} : memref<1x1x128xf32, #tpu.memory_space<vmem>>, vector<1x1x128xf32>,
    %c0_27 = arith.constant 0 : index
    %c0_28 = arith.constant 0 : index
    %c0_29 = arith.constant 0 : index
    %45 = vector.load %arg7[%c0_27, %c0_28, %c0_29] : memref<1x1x128xf32, #tpu.memory_space<vmem>>, vector<1x1x128xf32>
    %46 = vector.shape_cast %45 : vector<1x1x128xf32> to vector<1x128xf32>
    %47 = vector.shape_cast %41 : vector<1x128xf32> to vector<1x1x128xf32>
    tpu.vector_store %arg7[%c0_27, %c0_28, %c0_29], %47 {strides = array<i32>} : memref<1x1x128xf32, #tpu.memory_space<vmem>>, vector<1x1x128xf32>,
    return
  }
  func.func @transform_0(%arg0: i32) -> (i32, i32, i32) {
    %c0_i32 = arith.constant 0 : i32
    %c0_i32_0 = arith.constant 0 : i32
    %c0_i32_1 = arith.constant 0 : i32
    return %arg0, %c0_i32, %c0_i32_0 : i32, i32, i32
  }
  func.func @transform_1(%arg0: i32) -> (i32, i32) {
    %c0_i32 = arith.constant 0 : i32
    %c0_i32_0 = arith.constant 0 : i32
    %c0_i32_1 = arith.constant 0 : i32
    return %c0_i32, %c0_i32_0 : i32, i32
  }
  func.func @transform_2(%arg0: i32) -> (i32, i32) {
    %c0_i32 = arith.constant 0 : i32
    %c0_i32_0 = arith.constant 0 : i32
    %c0_i32_1 = arith.constant 0 : i32
    return %c0_i32, %c0_i32_0 : i32, i32
  }
  func.func @transform_3(%arg0: i32) -> (i32, i32, i32) {
    %c0_i32 = arith.constant 0 : i32
    %c0_i32_0 = arith.constant 0 : i32
    %c0_i32_1 = arith.constant 0 : i32
    %c0_i32_2 = arith.constant 0 : i32
    return %c0_i32, %c0_i32_0, %c0_i32_1 : i32, i32, i32
  }
  func.func @transform_4(%arg0: i32) -> (i32, i32, i32) {
    %c0_i32 = arith.constant 0 : i32
    %c0_i32_0 = arith.constant 0 : i32
    %c0_i32_1 = arith.constant 0 : i32
    return %arg0, %c0_i32, %c0_i32_0 : i32, i32, i32
  }
  func.func @transform_5(%arg0: i32) -> (i32, i32, i32) {
    %c0_i32 = arith.constant 0 : i32
    %c0_i32_0 = arith.constant 0 : i32
    %c0_i32_1 = arith.constant 0 : i32
    return %arg0, %c0_i32, %c0_i32_0 : i32, i32, i32
  }
  func.func @transform_6(%arg0: i32) -> (i32, i32, i32) {
    %c0_i32 = arith.constant 0 : i32
    %c0_i32_0 = arith.constant 0 : i32
    %c0_i32_1 = arith.constant 0 : i32
    return %arg0, %c0_i32, %c0_i32_0 : i32, i32, i32
  }
}

module attributes {stable_mosaic.version = 11 : i64} {
  func.func @residual_proj_kernel(%arg0: i32, %arg1: memref<16x128xbf16, #tpu.memory_space<vmem>>, %arg2: memref<1x128xf32, #tpu.memory_space<vmem>>, %arg3: memref<1x128xf32, #tpu.memory_space<vmem>>, %arg4: memref<16x128xbf16, #tpu.memory_space<vmem>>, %arg5: memref<1x128xf32, #tpu.memory_space<vmem>>, %arg6: memref<1x128xf32, #tpu.memory_space<vmem>>, %arg7: memref<16x128xf32, #tpu.memory_space<vmem>>) attributes {dimension_semantics = [#tpu.dimension_semantics<parallel>], iteration_bounds = array<i64: 1>, scalar_prefetch = 0 : i64, scratch_operands = 0 : i64, tpu.core_type = #tpu.core_type<tc>, window_params = [{transform_indices = @transform_0, window_bounds = array<i64: 16, 128>}, {pipeline_mode = #tpu.pipeline_mode<synchronous>, transform_indices = @transform_1, window_bounds = array<i64: 1, 128>}, {pipeline_mode = #tpu.pipeline_mode<synchronous>, transform_indices = @transform_2, window_bounds = array<i64: 1, 128>}, {transform_indices = @transform_3, window_bounds = array<i64: 16, 128>}, {pipeline_mode = #tpu.pipeline_mode<synchronous>, transform_indices = @transform_4, window_bounds = array<i64: 1, 128>}, {pipeline_mode = #tpu.pipeline_mode<synchronous>, transform_indices = @transform_5, window_bounds = array<i64: 1, 128>}, {transform_indices = @transform_6, window_bounds = array<i64: 16, 128>}]} {
    %c0 = arith.constant 0 : index
    %c0_0 = arith.constant 0 : index
    %0 = vector.load %arg1[%c0, %c0_0] : memref<16x128xbf16, #tpu.memory_space<vmem>>, vector<16x128xbf16>
    %1 = arith.extf %0 : vector<16x128xbf16> to vector<16x128xf32>
    %c0_1 = arith.constant 0 : index
    %c0_2 = arith.constant 0 : index
    %2 = vector.load %arg2[%c0_1, %c0_2] : memref<1x128xf32, #tpu.memory_space<vmem>>, vector<1x128xf32>
    %3 = vector.broadcast %2 : vector<1x128xf32> to vector<16x128xf32>
    %4 = arith.mulf %1, %3 : vector<16x128xf32>
    %c0_3 = arith.constant 0 : index
    %c0_4 = arith.constant 0 : index
    %5 = vector.load %arg3[%c0_3, %c0_4] : memref<1x128xf32, #tpu.memory_space<vmem>>, vector<1x128xf32>
    %6 = vector.broadcast %5 : vector<1x128xf32> to vector<16x128xf32>
    %7 = arith.addf %4, %6 : vector<16x128xf32>
    %c0_5 = arith.constant 0 : index
    %c0_6 = arith.constant 0 : index
    %8 = vector.load %arg4[%c0_5, %c0_6] : memref<16x128xbf16, #tpu.memory_space<vmem>>, vector<16x128xbf16>
    %9 = arith.extf %8 : vector<16x128xbf16> to vector<16x128xf32>
    %c0_7 = arith.constant 0 : index
    %c0_8 = arith.constant 0 : index
    %10 = vector.load %arg5[%c0_7, %c0_8] : memref<1x128xf32, #tpu.memory_space<vmem>>, vector<1x128xf32>
    %11 = vector.broadcast %10 : vector<1x128xf32> to vector<16x128xf32>
    %12 = arith.mulf %9, %11 : vector<16x128xf32>
    %13 = arith.addf %7, %12 : vector<16x128xf32>
    %c0_9 = arith.constant 0 : index
    %c0_10 = arith.constant 0 : index
    %14 = vector.load %arg6[%c0_9, %c0_10] : memref<1x128xf32, #tpu.memory_space<vmem>>, vector<1x128xf32>
    %15 = vector.broadcast %14 : vector<1x128xf32> to vector<16x128xf32>
    %16 = arith.addf %13, %15 : vector<16x128xf32>
    %cst = arith.constant 0.000000e+00 : f32
    %17 = vector.broadcast %cst : f32 to vector<16x128xf32>
    %18 = arith.maximumf %16, %17 : vector<16x128xf32>
    %c0_11 = arith.constant 0 : index
    %c0_12 = arith.constant 0 : index
    %19 = vector.load %arg7[%c0_11, %c0_12] : memref<16x128xf32, #tpu.memory_space<vmem>>, vector<16x128xf32>
    tpu.vector_store %arg7[%c0_11, %c0_12], %18 {strides = array<i32>} : memref<16x128xf32, #tpu.memory_space<vmem>>, vector<16x128xf32>,
    return
  }
  func.func @transform_0(%arg0: i32) -> (i32, i32) {
    %c0_i32 = arith.constant 0 : i32
    %c0_i32_0 = arith.constant 0 : i32
    return %arg0, %c0_i32 : i32, i32
  }
  func.func @transform_1(%arg0: i32) -> (i32, i32) {
    %c0_i32 = arith.constant 0 : i32
    %c0_i32_0 = arith.constant 0 : i32
    %c0_i32_1 = arith.constant 0 : i32
    return %c0_i32, %c0_i32_0 : i32, i32
  }
  func.func @transform_2(%arg0: i32) -> (i32, i32) {
    %c0_i32 = arith.constant 0 : i32
    %c0_i32_0 = arith.constant 0 : i32
    %c0_i32_1 = arith.constant 0 : i32
    return %c0_i32, %c0_i32_0 : i32, i32
  }
  func.func @transform_3(%arg0: i32) -> (i32, i32) {
    %c0_i32 = arith.constant 0 : i32
    %c0_i32_0 = arith.constant 0 : i32
    return %arg0, %c0_i32 : i32, i32
  }
  func.func @transform_4(%arg0: i32) -> (i32, i32) {
    %c0_i32 = arith.constant 0 : i32
    %c0_i32_0 = arith.constant 0 : i32
    %c0_i32_1 = arith.constant 0 : i32
    return %c0_i32, %c0_i32_0 : i32, i32
  }
  func.func @transform_5(%arg0: i32) -> (i32, i32) {
    %c0_i32 = arith.constant 0 : i32
    %c0_i32_0 = arith.constant 0 : i32
    %c0_i32_1 = arith.constant 0 : i32
    return %c0_i32, %c0_i32_0 : i32, i32
  }
  func.func @transform_6(%arg0: i32) -> (i32, i32) {
    %c0_i32 = arith.constant 0 : i32
    %c0_i32_0 = arith.constant 0 : i32
    return %arg0, %c0_i32 : i32, i32
  }
}

</mosaic_0001>

<bundles_post_ra>
// kernel: basic_block_1d.3
= control target key start
LH: loop header
LB: loop body
LE: loop exit
PB: predicated region body
PF: predicated region fallthrough
CT: control target
= control target key end

     0   :  { %s894_s27 = smov 0   ;;  %s943_s0 = inlined_call_operand.vmem [shape: f32[2,9,8], index: 0, kind: input, shape index: {}]   ;;  %s944_s1 = inlined_call_operand.vmem [shape: f32[2,8,128], index: 1, kind: input, shape index: {}]   ;;  %s945_s2 = inlined_call_operand.vmem [shape: f32[1,8,128], index: 2, kind: input, shape index: {}]   ;;  %s946_s3 = inlined_call_operand.vmem [shape: bf16[2,8,128], index: 3, kind: output, shape index: {0}]   ;;  %s947_s4 = inlined_call_operand.vmem [shape: f32[2,1,128], index: 4, kind: output, shape index: {1}]   ;;  %s948_s5 = inlined_call_operand.vmem [shape: f32[2,1,128], index: 5, kind: output, shape index: {2}]   ;;  %s949_s6 = inlined_call_operand.vmem [shape: bf16[2,8,128], index: 6, kind: output, shape index: {3}]   ;;  %s950_s7 = inlined_call_operand.vmem [shape: f32[2,1,128], index: 7, kind: output, shape index: {4}]   ;;  %s951_s8 = inlined_call_operand.vmem [shape: f32[2,1,128], index: 8, kind: output, shape index: {5}]  }
   0x1 LB: > { %s792_s28 = sadd.s32 4294967295, %s845_s27   ;;  %p796_p0 = scmp.ge.s32.totalorder %s845_s27, 1  ;;  %s845_s27 = sphi %s894_s27, %s19_s27  }
   0x2   : > { %p273_p1 = scmp.lt.s32.totalorder %s845_s27, 3 }
   0x4   : > { %p274_p2 = pnand %p796_p0, %p273_p1 }
   0x5   : > { %p322_p3 = scmp.lt.s32.totalorder (!%p274_p2), %s792_s28, 1 }
   0x6   : > { %277 = sbr.rel (%p274_p2) target bundleno = 227 (0xe3), region = 32 }
   0xb   : > { %v801_v0 = vld [vmem:[%s944_s1 + $0x8] sm:$0xff]  ;;  %v348_v1 = vld [vmem:[%s944_s1] sm:$0xff]  ;;  %v847_v2 = vmov 0.0   ;;  %vm848_vm0 = vmmov 0   ;;  %s953_s28 = smov (!%p322_p3, %s792_s28), 1  ;;  %vm352_vm1 = vcmask 64512  }
   0xc   : > { %814 = vmatprep.subr.mxu0 %v847_v2  ;;  %819 = vmatprep.subr.mxu1 %v847_v2  ;;  %s807_s11 = sshll.u32 %s953_s28, 4  ;;  %v517_v3 = vld [vmem:[%s945_s2] sm:$0xff]  ;;  %s799_s17 = sshll.u32 %s953_s28, 2 }
   0xd   : > { %815 = vmatpush3.msra.mxu0 %v801_v0  ;;  %816 = vmatprep.mubr.msk.f32.mxu0 %vm848_vm0, %v847_v2  ;;  %s326_s14 = scalar_lea.vmem %s943_s0, %s807_s11  ;;  %s330_s20 = scalar_lea.vmem %s946_s3, %s799_s17 }
   0xe   : > { %820 = vmatpush3.msra.mxu1 %v348_v1  ;;  %821 = vmatprep.mubr.msk.f32.mxu1 %vm848_vm0, %v847_v2  ;;  %v349_v4 = vld [vmem:[%s326_s14 + $0x1] sm:$0xff]  ;;  %s340_s23 = scalar_lea.vmem %s949_s6, %s799_s17  ;;  %s333_s26 = scalar_lea.vmem %s947_s4, %s953_s28 }
   0xf   : > { %824 = vmatprep.subr.mxu0 %v847_v2  ;;  %v347_v5 = vld [vmem:[%s326_s14] sm:$0xff]  ;;  %817 = vmatmul.mubr.msk.f32.vlgmr.msra.gmra.mxu0 %vm352_vm1, %v349_v4  ;;  %s336_s9 = scalar_lea.vmem %s948_s5, %s953_s28  ;;  %s343_s12 = scalar_lea.vmem %s950_s7, %s953_s28 }
  0x10   : > { %822 = vmatmul.mubr.msk.f32.vlgmr.msra.gmra.mxu1 %vm352_vm1, %v347_v5  ;;  %825 = vmatpush3.msra.mxu0 %v517_v3  ;;  %s346_s15 = scalar_lea.vmem %s951_s8, %s953_s28 }
  0x11   : > { %826 = vmatprep.mubr.msk.f32.mxu0 %vm848_vm0, %v847_v2 }
  0x13   : > { %827 = vmatmul.mubr.msk.f32.vlgmr.msra.gmra.mxu0 %vm352_vm1, %v347_v5 }
  0xcf   : > { %v422_v6 = vpop.f32.mrf.mxu0 }
  0xd0   : > { %v495_v7 = vpop.f32.mrf.mxu1 }
  0xd1   : > { %v496_v8 = vadd.f32 %v495_v7, %v422_v6  ;;  %v818_v9 = vpop.f32.mrf.mxu0 }
  0xd2   : > { %v823_v10 = vpop.f32.mrf.mxu1 }
  0xd3   : > { %v499_v11 = vpack.c.bf16 %v496_v8, %v496_v8  ;;  %v501_v12 = vrot.slane %v496_v8, 4  ;;  %v507_v13 = vmul.f32 %v496_v8, %v496_v8  ;;  %v587_v14 = vpop.f32.mrf.mxu0 }
  0xd4   : > { %v591_v17 = vpack.c.bf16 %v587_v14, %v587_v14  ;;  %v593_v18 = vrot.slane %v587_v14, 4  ;;  %v599_v19 = vmul.f32 %v587_v14, %v587_v14 }
  0xd5   : > { %v502_v15 = vadd.f32 %v501_v12, %v496_v8  ;;  %v508_v16 = vrot.slane %v507_v13, 4  ;;  %500 = vst [vmem:[%s330_s20] sm:$0xf] %v499_v11  ;;  %v828_v20 = vpop.f32.mrf.mxu0 }
  0xd6   : > { %592 = vst [vmem:[%s340_s23] sm:$0xf] %v591_v17  ;;  %v594_v23 = vadd.f32 %v593_v18, %v587_v14  ;;  %v600_v24 = vrot.slane %v599_v19, 4 }
  0xd7   : > { %v503_v21 = vrot.slane %v502_v15, 2  ;;  %v509_v22 = vadd.f32 %v508_v16, %v507_v13 }
  0xd8   : > { %v595_v27 = vrot.slane %v594_v23, 2  ;;  %v601_v28 = vadd.f32 %v600_v24, %v599_v19 }
  0xd9   : > { %v504_v25 = vadd.f32 %v503_v21, %v502_v15  ;;  %v510_v26 = vrot.slane %v509_v22, 2 }
  0xda   : > { %v596_v31 = vadd.f32 %v595_v27, %v594_v23  ;;  %v602_v32 = vrot.slane %v601_v28, 2 }
  0xdb   : > { %v505_v29 = vrot.slane %v504_v25, 1  ;;  %v511_v30 = vadd.f32 %v510_v26, %v509_v22 }
  0xdc   : > { %v597_v35 = vrot.slane %v596_v31, 1  ;;  %v603_v36 = vadd.f32 %v602_v32, %v601_v28 }
  0xdd   : > { %v506_v33 = vadd.f32 %v505_v29, %v504_v25  ;;  %v512_v34 = vrot.slane %v511_v30, 1 }
  0xde   : > { %v598_v38 = vadd.f32 %v597_v35, %v596_v31  ;;  %v604_v39 = vrot.slane %v603_v36, 1 }
  0xdf   : > { %v513_v37 = vadd.f32 %v512_v34, %v511_v30  ;;  %514 = vst [vmem:[%s333_s26] sm:$0x1] %v506_v33 }
  0xe0   : > { %606 = vst [vmem:[%s343_s12] sm:$0x1] %v598_v38  ;;  %v605_v40 = vadd.f32 %v604_v39, %v603_v36 }
  0xe1   : > { %515 = vst [vmem:[%s336_s9] sm:$0x1] %v513_v37 }
  0xe2   : > { %607 = vst [vmem:[%s346_s15] sm:$0x1] %v605_v40 }
  0xe3 PF: > { %s19_s27 = sadd.s32 1, %s845_s27  }
  0xe4   : > { %p16_p4 = scmp.ge.s32.totalorder %s19_s27, 4  }
  0xe6   :  { %18 = sbr.rel (!%p16_p4) target bundleno = 1 (0x1), region = 123 }

// kernel: basic_block_1d.4
= control target key start
LH: loop header
LB: loop body
LE: loop exit
PB: predicated region body
PF: predicated region fallthrough
CT: control target
= control target key end

     0   :  { %s926_s21 = smov 0   ;;  %s1167_s0 = inlined_call_operand.vmem [shape: bf16[2,8,128], index: 0, kind: input, shape index: {}]   ;;  %s1168_s1 = inlined_call_operand.vmem [shape: f32[1,128], index: 1, kind: input, shape index: {}]   ;;  %s1169_s2 = inlined_call_operand.vmem [shape: f32[1,128], index: 2, kind: input, shape index: {}]   ;;  %s1170_s3 = inlined_call_operand.vmem [shape: f32[3,128,128], index: 3, kind: input, shape index: {}]   ;;  %s1171_s4 = inlined_call_operand.vmem [shape: bf16[2,8,128], index: 4, kind: output, shape index: {0}]   ;;  %s1172_s5 = inlined_call_operand.vmem [shape: f32[2,1,128], index: 5, kind: output, shape index: {1}]   ;;  %s1173_s6 = inlined_call_operand.vmem [shape: f32[2,1,128], index: 6, kind: output, shape index: {2}]  }
   0x1 LB: > { %s672_s22 = sadd.s32 4294967295, %s887_s21   ;;  %p676_p0 = scmp.ge.s32.totalorder %s887_s21, 1  ;;  %s887_s21 = sphi %s926_s21, %s17_s21  }
   0x2   : > { %p216_p1 = scmp.lt.s32.totalorder %s887_s21, 3 }
   0x4   : > { %p217_p2 = pnand %p676_p0, %p216_p1 }
   0x5   : > { %p250_p3 = scmp.lt.s32.totalorder (!%p217_p2), %s672_s22, 1 }
   0x6   : > { %220 = sbr.rel (%p217_p2) target bundleno = 288 (0x120), region = 36 }
   0xb   : > { %v298_v0 = vld [vmem:[%s1170_s3 + $0x78] sm:$0xff]  ;;  %v889_v1 = vmov 0.0   ;;  %v297_v2 = vld [vmem:[%s1170_s3 + $0x70] sm:$0xff]  ;;  %vm890_vm0 = vmmov 0   ;;  %v296_v3 = vld [vmem:[%s1170_s3 + $0x68] sm:$0xff]  ;;  %s1175_s22 = smov (!%p250_p3, %s672_s22), 1  ;;  %v473_v60 = vlaneseq }
   0xc   : > { %766 = vmatprep.subr.mxu0 %v889_v1  ;;  %801 = vmatprep.subr.mxu1 %v889_v1  ;;  %v295_v4 = vld [vmem:[%s1170_s3 + $0x60] sm:$0xff]  ;;  %v712_v5 = vld [vmem:[%s1170_s3 + $0x178] sm:$0xff]  ;;  %v711_v6 = vld [vmem:[%s1170_s3 + $0x170] sm:$0xff]  ;;  %s677_s15 = sshll.u32 %s1175_s22, 2  ;;  %s263_s28 = scalar_lea.vmem %s1173_s6, %s1175_s22 }
   0xd   : > { %767 = vmatpush3.msra.mxu0 %v298_v0  ;;  %798 = vmatprep.mubr.msk.f32.mxu0 %vm890_vm0, %v889_v1  ;;  %v294_v7 = vld [vmem:[%s1170_s3 + $0x58] sm:$0xff]  ;;  %v710_v8 = vld [vmem:[%s1170_s3 + $0x168] sm:$0xff]  ;;  %v293_v9 = vld [vmem:[%s1170_s3 + $0x50] sm:$0xff]  ;;  %s253_s26 = scalar_lea.vmem %s1167_s0, %s677_s15  ;;  %v474_v61 = vshrl.u32 %v473_v60, 7  ;;  %s257_s23 = scalar_lea.vmem %s1171_s4, %s677_s15 }
   0xe   : > { %768 = vmatprep.subr.mxu0 %v889_v1  ;;  %833 = vmatprep.mubr.msk.f32.mxu1 %vm890_vm0, %v889_v1  ;;  %v709_v10 = vld [vmem:[%s1170_s3 + $0x160] sm:$0xff]  ;;  %v292_v11 = vld [vmem:[%s1170_s3 + $0x48] sm:$0xff]  ;;  %v708_v12 = vld [vmem:[%s1170_s3 + $0x158] sm:$0xff] }
   0xf   : > { %769 = vmatpush3.msra.mxu0 %v297_v2  ;;  %802 = vmatpush3.msra.mxu1 %v712_v5  ;;  %v291_v13 = vld [vmem:[%s1170_s3 + $0x40] sm:$0xff]  ;;  %v707_v14 = vld [vmem:[%s1170_s3 + $0x150] sm:$0xff]  ;;  %v290_v16 = vld [vmem:[%s1170_s3 + $0x38] sm:$0xff]  ;;  %vm548_vm1 = vcmp.eq.s32.totalorder %v474_v61, 7  ;;  %vm475_vm2 = vcmp.eq.s32.totalorder %v474_v61, 0 }
  0x10   : > { %770 = vmatprep.subr.mxu0 %v889_v1  ;;  %803 = vmatprep.subr.mxu1 %v889_v1  ;;  %v264_v15 = vld [vmem:[%s253_s26] sm:$0xf]  ;;  %v706_v17 = vld [vmem:[%s1170_s3 + $0x148] sm:$0xff]  ;;  %v289_v18 = vld [vmem:[%s1170_s3 + $0x30] sm:$0xff]  ;;  %s260_s26 = scalar_lea.vmem %s1172_s5, %s1175_s22 }
  0x11   : > { %771 = vmatpush3.msra.mxu0 %v296_v3  ;;  %804 = vmatpush3.msra.mxu1 %v711_v6  ;;  %v265_v19 = vunpack.c.l.bf16 %v264_v15  ;;  %v705_v20 = vld [vmem:[%s1170_s3 + $0x140] sm:$0xff]  ;;  %v288_v22 = vld [vmem:[%s1170_s3 + $0x28] sm:$0xff]  ;;  %v704_v23 = vld [vmem:[%s1170_s3 + $0x138] sm:$0xff] }
  0x12   : > { %772 = vmatprep.subr.mxu0 %v889_v1  ;;  %805 = vmatprep.subr.mxu1 %v889_v1  ;;  %v679_v21 = vld [vmem:[%s1168_s1] ss:$0 sm:$0xff]  ;;  %v703_v26 = vld [vmem:[%s1170_s3 + $0x130] sm:$0xff]  ;;  %v286_v28 = vld [vmem:[%s1170_s3 + $0x18] sm:$0xff] }
  0x13   : > { %773 = vmatpush3.msra.mxu0 %v295_v4  ;;  %806 = vmatpush3.msra.mxu1 %v710_v8  ;;  %v287_v24 = vld [vmem:[%s1170_s3 + $0x20] sm:$0xff]  ;;  %v273_v25 = vmul.f32 %v679_v21, %v265_v19  ;;  %v702_v29 = vld [vmem:[%s1170_s3 + $0x128] sm:$0xff]  ;;  %v285_v30 = vld [vmem:[%s1170_s3 + $0x10] sm:$0xff] }
  0x14   : > { %774 = vmatprep.subr.mxu0 %v889_v1  ;;  %807 = vmatprep.subr.mxu1 %v889_v1  ;;  %v680_v27 = vld [vmem:[%s1169_s2] ss:$0 sm:$0xff]  ;;  %v284_v33 = vld [vmem:[%s1170_s3 + $0x8] sm:$0xff]  ;;  %v700_v34 = vld [vmem:[%s1170_s3 + $0x118] sm:$0xff] }
  0x15   : > { %775 = vmatpush3.msra.mxu0 %v294_v7  ;;  %808 = vmatpush3.msra.mxu1 %v709_v10  ;;  %v281_v31 = vadd.f32 %v680_v27, %v273_v25  ;;  %v701_v32 = vld [vmem:[%s1170_s3 + $0x120] sm:$0xff]  ;;  %v699_v37 = vld [vmem:[%s1170_s3 + $0x110] sm:$0xff]  ;;  %v696_v38 = vld [vmem:[%s1170_s3 + $0xf8] sm:$0xff] }
  0x16   : > { %776 = vmatprep.subr.mxu0 %v889_v1  ;;  %809 = vmatprep.subr.mxu1 %v889_v1  ;;  %v283_v35 = vld [vmem:[%s1170_s3] sm:$0xff]  ;;  %v698_v39 = vld [vmem:[%s1170_s3 + $0x108] sm:$0xff]  ;;  %v695_v40 = vld [vmem:[%s1170_s3 + $0xf0] sm:$0xff] }
  0x17   : > { %777 = vmatpush3.msra.mxu0 %v293_v9  ;;  %810 = vmatpush3.msra.mxu1 %v708_v12  ;;  %v1066_v36 = vmax.f32 %v281_v31, 0.0  ;;  %v697_v41 = vld [vmem:[%s1170_s3 + $0x100] sm:$0xff]  ;;  %v694_v42 = vld [vmem:[%s1170_s3 + $0xe8] sm:$0xff]  ;;  %v692_v44 = vld [vmem:[%s1170_s3 + $0xd8] sm:$0xff] }
  0x18   : > { %778 = vmatprep.subr.mxu0 %v889_v1  ;;  %811 = vmatprep.subr.mxu1 %v889_v1  ;;  %v693_v43 = vld [vmem:[%s1170_s3 + $0xe0] sm:$0xff]  ;;  %v691_v45 = vld [vmem:[%s1170_s3 + $0xd0] sm:$0xff]  ;;  %v690_v46 = vld [vmem:[%s1170_s3 + $0xc8] sm:$0xff] }
  0x19   : > { %779 = vmatpush3.msra.mxu0 %v292_v11  ;;  %812 = vmatpush3.msra.mxu1 %v707_v14  ;;  %v689_v47 = vld [vmem:[%s1170_s3 + $0xc0] sm:$0xff]  ;;  %v688_v48 = vld [vmem:[%s1170_s3 + $0xb8] sm:$0xff]  ;;  %v687_v49 = vld [vmem:[%s1170_s3 + $0xb0] sm:$0xff] }
  0x1a   : > { %780 = vmatprep.subr.mxu0 %v889_v1  ;;  %813 = vmatprep.subr.mxu1 %v889_v1  ;;  %v686_v50 = vld [vmem:[%s1170_s3 + $0xa8] sm:$0xff]  ;;  %v685_v51 = vld [vmem:[%s1170_s3 + $0xa0] sm:$0xff]  ;;  %v684_v52 = vld [vmem:[%s1170_s3 + $0x98] sm:$0xff] }
  0x1b   : > { %781 = vmatpush3.msra.mxu0 %v291_v13  ;;  %814 = vmatpush3.msra.mxu1 %v706_v17  ;;  %v683_v53 = vld [vmem:[%s1170_s3 + $0x90] sm:$0xff]  ;;  %v682_v54 = vld [vmem:[%s1170_s3 + $0x88] sm:$0xff]  ;;  %v681_v55 = vld [vmem:[%s1170_s3 + $0x80] sm:$0xff] }
  0x1c   : > { %782 = vmatprep.subr.mxu0 %v889_v1  ;;  %815 = vmatprep.subr.mxu1 %v889_v1 }
  0x1d   : > { %783 = vmatpush3.msra.mxu0 %v290_v16  ;;  %816 = vmatpush3.msra.mxu1 %v705_v20 }
  0x1e   : > { %784 = vmatprep.subr.mxu0 %v889_v1  ;;  %817 = vmatprep.subr.mxu1 %v889_v1 }
  0x1f   : > { %785 = vmatpush3.msra.mxu0 %v289_v18  ;;  %818 = vmatpush3.msra.mxu1 %v704_v23 }
  0x20   : > { %786 = vmatprep.subr.mxu0 %v889_v1  ;;  %819 = vmatprep.subr.mxu1 %v889_v1 }
  0x21   : > { %787 = vmatpush3.msra.mxu0 %v288_v22  ;;  %820 = vmatpush3.msra.mxu1 %v703_v26 }
  0x22   : > { %788 = vmatprep.subr.mxu0 %v889_v1  ;;  %821 = vmatprep.subr.mxu1 %v889_v1 }
  0x23   : > { %789 = vmatpush3.msra.mxu0 %v287_v24  ;;  %822 = vmatpush3.msra.mxu1 %v702_v29 }
  0x24   : > { %790 = vmatprep.subr.mxu0 %v889_v1  ;;  %823 = vmatprep.subr.mxu1 %v889_v1 }
  0x25   : > { %791 = vmatpush3.msra.mxu0 %v286_v28  ;;  %824 = vmatpush3.msra.mxu1 %v701_v32 }
  0x26   : > { %792 = vmatprep.subr.mxu0 %v889_v1  ;;  %825 = vmatprep.subr.mxu1 %v889_v1 }
  0x27   : > { %793 = vmatpush3.msra.mxu0 %v285_v30  ;;  %826 = vmatpush3.msra.mxu1 %v700_v34 }
  0x28   : > { %794 = vmatprep.subr.mxu0 %v889_v1  ;;  %827 = vmatprep.subr.mxu1 %v889_v1 }
  0x29   : > { %795 = vmatpush3.msra.mxu0 %v284_v33  ;;  %828 = vmatpush3.msra.mxu1 %v699_v37 }
  0x2a   : > { %796 = vmatprep.subr.mxu0 %v889_v1  ;;  %829 = vmatprep.subr.mxu1 %v889_v1 }
  0x2b   : > { %797 = vmatpush3.msra.mxu0 %v283_v35  ;;  %830 = vmatpush3.msra.mxu1 %v698_v39 }
  0x2c   : > { %799 = vmatmul.mubr.f32.vlgmr.msra.gmra.mxu0 %v1066_v36  ;;  %836 = vmatprep.subr.mxu0 %v889_v1 }
  0x2d   : > { %837 = vmatpush3.msra.mxu0 %v696_v38  ;;  %831 = vmatprep.subr.mxu1 %v889_v1 }
  0x2e   : > { %838 = vmatprep.subr.mxu0 %v889_v1  ;;  %832 = vmatpush3.msra.mxu1 %v697_v41 }
  0x2f   : > { %839 = vmatpush3.msra.mxu0 %v695_v40  ;;  %834 = vmatmul.mubr.f32.vlgmr.msra.gmra.mxu1 %v1066_v36 }
  0x30   : > { %840 = vmatprep.subr.mxu0 %v889_v1  ;;  %868 = vmatprep.mubr.msk.f32.mxu0 %vm890_vm0, %v889_v1 }
  0x31   : > { %841 = vmatpush3.msra.mxu0 %v694_v42 }
  0x32   : > { %842 = vmatprep.subr.mxu0 %v889_v1 }
  0x33   : > { %843 = vmatpush3.msra.mxu0 %v693_v43 }
  0x34   : > { %844 = vmatprep.subr.mxu0 %v889_v1 }
  0x35   : > { %845 = vmatpush3.msra.mxu0 %v692_v44 }
  0x36   : > { %846 = vmatprep.subr.mxu0 %v889_v1 }
  0x37   : > { %847 = vmatpush3.msra.mxu0 %v691_v45 }
  0x38   : > { %848 = vmatprep.subr.mxu0 %v889_v1 }
  0x39   : > { %849 = vmatpush3.msra.mxu0 %v690_v46 }
  0x3a   : > { %850 = vmatprep.subr.mxu0 %v889_v1 }
  0x3b   : > { %851 = vmatpush3.msra.mxu0 %v689_v47 }
  0x3c   : > { %852 = vmatprep.subr.mxu0 %v889_v1 }
  0x3d   : > { %853 = vmatpush3.msra.mxu0 %v688_v48 }
  0x3e   : > { %854 = vmatprep.subr.mxu0 %v889_v1 }
  0x3f   : > { %855 = vmatpush3.msra.mxu0 %v687_v49 }
  0x40   : > { %856 = vmatprep.subr.mxu0 %v889_v1 }
  0x41   : > { %857 = vmatpush3.msra.mxu0 %v686_v50 }
  0x42   : > { %858 = vmatprep.subr.mxu0 %v889_v1 }
  0x43   : > { %859 = vmatpush3.msra.mxu0 %v685_v51 }
  0x44   : > { %860 = vmatprep.subr.mxu0 %v889_v1 }
  0x45   : > { %861 = vmatpush3.msra.mxu0 %v684_v52 }
  0x46   : > { %862 = vmatprep.subr.mxu0 %v889_v1 }
  0x47   : > { %863 = vmatpush3.msra.mxu0 %v683_v53 }
  0x48   : > { %864 = vmatprep.subr.mxu0 %v889_v1 }
  0x49   : > { %865 = vmatpush3.msra.mxu0 %v682_v54 }
  0x4a   : > { %866 = vmatprep.subr.mxu0 %v889_v1 }
  0x4b   : > { %867 = vmatpush3.msra.mxu0 %v681_v55 }
  0x4c   : > { %869 = vmatmul.mubr.f32.vlgmr.msra.gmra.mxu0 %v1066_v36 }
  0xec   : > { %v365_v56 = vpop.f32.mrf.mxu0 }
  0xed   : > { %v476_v62 = vrot.slane %v365_v56, 7 }
  0xee   : > { %v800_v57 = vpop.f32.mrf.mxu0 }
  0xef   : > { %v469_v58 = vpop.f32.mrf.mxu1  ;;  %v477_v2 = vsel %vm475_vm2, 0.0, %v476_v62 }
  0xf0   : > { %v549_v63 = vrot.slane %v469_v58, 1 }
  0xf1   : > { %v835_v59 = vpop.f32.mrf.mxu1 }
  0xf2   : > { %v550_v0 = vsel %vm548_vm1, 0.0, %v549_v63 }
 0x10c   : > { %v544_v3 = vpop.f32.mrf.mxu0 }
 0x10d   : > { %v545_v4 = vadd.f32 %v544_v3, %v477_v2 }
 0x10e   : > { %v870_v1 = vpop.f32.mrf.mxu0 }
 0x10f   : > { %v551_v5 = vadd.f32 %v550_v0, %v545_v4 }
 0x111   : > { %v552_v6 = vpack.c.bf16 %v551_v5, %v551_v5  ;;  %v554_v7 = vrot.slane %v551_v5, 4  ;;  %v560_v8 = vmul.f32 %v551_v5, %v551_v5 }
 0x113   : > { %553 = vst [vmem:[%s257_s23] sm:$0xf] %v552_v6  ;;  %v555_v9 = vadd.f32 %v554_v7, %v551_v5  ;;  %v561_v10 = vrot.slane %v560_v8, 4 }
 0x115   : > { %v556_v11 = vrot.slane %v555_v9, 2  ;;  %v562_v12 = vadd.f32 %v561_v10, %v560_v8 }
 0x117   : > { %v557_v13 = vadd.f32 %v556_v11, %v555_v9  ;;  %v563_v14 = vrot.slane %v562_v12, 2 }
 0x119   : > { %v558_v15 = vrot.slane %v557_v13, 1  ;;  %v564_v16 = vadd.f32 %v563_v14, %v562_v12 }
 0x11b   : > { %v559_v17 = vadd.f32 %v558_v15, %v557_v13  ;;  %v565_v18 = vrot.slane %v564_v16, 1 }
 0x11d   : > { %v566_v19 = vadd.f32 %v565_v18, %v564_v16  ;;  %567 = vst [vmem:[%s260_s26] sm:$0x1] %v559_v17 }
 0x11f   : > { %568 = vst [vmem:[%s263_s28] sm:$0x1] %v566_v19 }
 0x120 PF: > { %s17_s21 = sadd.s32 1, %s887_s21  }
 0x121   : > { %p14_p4 = scmp.ge.s32.totalorder %s17_s21, 4  }
 0x123   :  { %16 = sbr.rel (!%p14_p4) target bundleno = 1 (0x1), region = 92 }

// kernel: basic_block_1d.5
= control target key start
LH: loop header
LB: loop body
LE: loop exit
PB: predicated region body
PF: predicated region fallthrough
CT: control target
= control target key end

     0   :  { %s148_s0 = inlined_call_operand.vmem [shape: bf16[16,128], index: 0, kind: input, shape index: {}]   ;;  %s149_s1 = inlined_call_operand.vmem [shape: f32[1,128], index: 1, kind: input, shape index: {}]   ;;  %s150_s2 = inlined_call_operand.vmem [shape: f32[1,128], index: 2, kind: input, shape index: {}]   ;;  %s151_s3 = inlined_call_operand.vmem [shape: bf16[16,128], index: 3, kind: input, shape index: {}]   ;;  %s152_s4 = inlined_call_operand.vmem [shape: f32[1,128], index: 4, kind: input, shape index: {}]   ;;  %s153_s5 = inlined_call_operand.vmem [shape: f32[1,128], index: 5, kind: input, shape index: {}]   ;;  %s154_s6 = inlined_call_operand.vmem [shape: f32[16,128], index: 6, kind: output, shape index: {}]  }
   0x1   :  { %v82_v0 = vld [vmem:[%s148_s0] sm:$0xff]  }
   0x2   :  { %v77_v1 = vld [vmem:[%s149_s1] ss:$0 sm:$0xff]  ;;  %v83_v2 = vunpack.c.l.bf16 %v82_v0  ;;  %v84_v5 = vunpack.c.h.bf16 %v82_v0 }
   0x3   :  { %v86_v3 = vld [vmem:[%s151_s3] sm:$0xff]  }
   0x4   :  { %v79_v4 = vld [vmem:[%s152_s4] ss:$0 sm:$0xff]  ;;  %v87_v7 = vunpack.c.l.bf16 %v86_v3  ;;  %v88_v8 = vunpack.c.h.bf16 %v86_v3  ;;  %v34_v9 = vmul.f32 %v83_v2, %v77_v1  ;;  %v35_v10 = vmul.f32 %v84_v5, %v77_v1 }
   0x5   :  { %v78_v6 = vld [vmem:[%s150_s2] ss:$0 sm:$0xff] }
   0x6   :  { %v56_v11 = vmul.f32 %v87_v7, %v79_v4  ;;  %v57_v12 = vmul.f32 %v88_v8, %v79_v4  ;;  %v43_v13 = vadd.f32 %v78_v6, %v34_v9  ;;  %v44_v14 = vadd.f32 %v78_v6, %v35_v10  ;;  %v80_v15 = vld [vmem:[%s153_s5] ss:$0 sm:$0xff] }
   0x8   :  { %v58_v16 = vadd.f32 %v56_v11, %v43_v13  ;;  %v59_v17 = vadd.f32 %v57_v12, %v44_v14 }
   0xa   :  { %v67_v18 = vadd.f32 %v80_v15, %v58_v16  ;;  %v68_v19 = vadd.f32 %v80_v15, %v59_v17 }
   0xc   :  { %v69_v20 = vmax.f32 %v67_v18, 0.0  ;;  %v70_v21 = vmax.f32 %v68_v19, 0.0 }
   0xe   :  { %71 = vst [vmem:[%s154_s6] sm:$0xff] %v69_v20  ;;  %72 = vst [vmem:[%s154_s6 + $0x8] sm:$0xff] %v70_v21 }

</bundles_post_ra>
